<compile_context>
chip_gen: v6e
topology: v6e:2x2x1
jax: 0.10.0
libtpu: 0.0.40
codegen_flags: <defaults>
</compile_context>

<pallas_src>
import math
from functools import partial

import jax
import jax.numpy as jnp
from jax import lax
from jax.experimental import pallas as pl
from jax.experimental.pallas import tpu as pltpu


_INV_SQRT2 = 1.0 / math.sqrt(2.0)


def _erf_approx(x):
    # Abramowitz & Stegun 7.1.26 rational approximation, |error| <= 1.5e-7.
    # exp and the reciprocal land on the EUP slot; the rest is VPU add/mul,
    # so this keeps the exact-GELU semantics of torch.nn.GELU() cheaply.
    a1, a2, a3, a4, a5 = (0.254829592, -0.284496736, 1.421413741,
                          -1.453152027, 1.061405429)
    p = 0.3275911
    sgn = jnp.where(x >= 0.0, 1.0, -1.0)
    ax = jnp.abs(x)
    denom = 1.0 + p * ax
    if denom.dtype == jnp.float32:
        t = pl.reciprocal(denom, approx=True)            # EUP, off the VALU slot
    else:                                                # bf16 elementwise path
        t = pl.reciprocal(denom.astype(jnp.float32), approx=True).astype(x.dtype)
    poly = ((((a5 * t + a4) * t + a3) * t + a2) * t + a1) * t
    return sgn * (1.0 - poly * jnp.exp(-ax * ax))


def _gelu_exact(x):
    # torch.nn.GELU() default ("none" approximation): x * Phi(x).
    return 0.5 * x * (1.0 + _erf_approx(x * _INV_SQRT2))


# ----------------------------------------------------------------------------
# Fused kernel: conv1(1x1) -> GELU -> conv2(1x1) on one (C_in, TILE_HW) slab,
# with the hidden dimension processed in chunks so the (hidden, T) f32
# intermediate never has to live in VMEM all at once.
# ----------------------------------------------------------------------------
def _make_kernel(h_chunk, n_chunks, compute_dtype, gelu_dtype):
    def kernel(x_ref, w1_ref, b1_ref, w2_ref, b2_ref, o_ref):
        x = x_ref[0].astype(compute_dtype)                # (C_in, T)
        c_out = o_ref.shape[1]
        t = x.shape[-1]

        def chunk(start):
            # conv1 (1x1) hidden-chunk: (h_chunk, C_in) @ (C_in, T), f32 acc.
            h = jnp.dot(w1_ref[pl.ds(start, h_chunk), :].astype(compute_dtype),
                        x, preferred_element_type=jnp.float32)
            h = h + b1_ref[pl.ds(start, h_chunk), :].astype(jnp.float32)
            h = _gelu_exact(h.astype(gelu_dtype))
            # TODO(synk): nn.Dropout with p > 0 (training-mode RNG dropout) is
            # not implemented; the module default (p = 0 -> Identity) runs here.
            # conv2 (1x1) partial product: (C_out, h_chunk) @ (h_chunk, T).
            return jnp.dot(w2_ref[:, pl.ds(start, h_chunk)].astype(compute_dtype),
                           h.astype(compute_dtype),
                           preferred_element_type=jnp.float32)

        if n_chunks == 1:
            acc = chunk(0)
        else:
            def body(c, acc):
                start = pl.multiple_of(c * h_chunk, h_chunk)
                return acc + chunk(start)
            acc = lax.fori_loop(0, n_chunks, body,
                                jnp.zeros((c_out, t), jnp.float32))

        acc = acc + b2_ref[...].astype(jnp.float32)       # (C_out, 1) bcast
        o_ref[0] = acc.astype(o_ref.dtype)

    return kernel


# ----------------------------------------------------------------------------
# Tiling / VMEM heuristics (generation-aware).
# ----------------------------------------------------------------------------
def _round_up(x, m):
    return ((x + m - 1) // m) * m


def _vmem_limit_bytes():
    cap = None
    try:
        cap = getattr(pltpu.get_tpu_info(), "vmem_capacity_bytes", None)
    except Exception:
        cap = None
    if not cap:
        cap = 64 * 1024 * 1024            # conservative: v7x per-TC physical VMEM
    # ~25% headroom for Mosaic internal scratch; never ask for more than 100 MiB.
    return int(min(cap * 3 // 4, 100 * 1024 * 1024))


def _pick_hidden_chunk(hidden):
    """Chunk the hidden dim (128-aligned) so the f32 intermediate stays small."""
    if hidden <= 512:
        return hidden, 1
    for c in (512, 256, 128):
        if hidden % c == 0:
            return c, hidden // c
    return hidden, 1                      # awkward hidden size: single pass


def _gelu_dtype(compute_dtype):
    # bf16 VPU/EUP datapaths exist on v6e/v7x; v5e and older would emulate.
    if jnp.dtype(compute_dtype) != jnp.dtype(jnp.bfloat16):
        return jnp.float32
    try:
        kind = jax.devices()[0].device_kind.lower()
    except Exception:
        kind = ""
    if any(v in kind for v in ("v2", "v3", "v4", "v5")):
        return jnp.float32
    return jnp.bfloat16


def _pick_tile_hw(n, hw, c_in, hidden, c_out, h_chunk,
                  act_itemsize, wgt_itemsize, vmem_limit, weight_buffers):
    """Largest MXU-aligned spatial tile fitting the derived VMEM budget."""
    # Resident weights/biases (single- or double-buffered).
    w_bytes = weight_buffers * wgt_itemsize * (hidden * (c_in + c_out) + hidden + c_out)
    avail = vmem_limit - w_bytes - 2 * 1024 * 1024        # Mosaic internal scratch
    # Per lane-column cost: double-buffered x/out blocks, f32 accumulator
    # (x2 for the loop carry), ~5 live f32 (h_chunk, T) elementwise temps.
    per_col = 2 * act_itemsize * (c_in + c_out) + 8 * c_out + 20 * h_chunk
    tile = max(avail // per_col, 128)
    tile = min(tile, 8192, _round_up(hw, 128))
    if n == 1:                            # expose >=2 tiles for v7x's two TCs
        tile = min(tile, max(128, _round_up((hw + 1) // 2, 128)))
    if tile >= 256:
        tile = (tile // 256) * 256        # 256-aligned for the v6e/v7x MXU
    else:
        tile = 128
    return int(tile)


# ----------------------------------------------------------------------------
# Forward wrapper.
# ----------------------------------------------------------------------------
@partial(jax.jit, static_argnames=("single_buffer_weights", "matmul_dtype"))
def _mlp2d_forward_impl(params, x_nchw, *, single_buffer_weights, matmul_dtype):
    w1, b1, w2, b2 = params["w1"], params["b1"], params["w2"], params["b2"]
    N, c_in, H, W = x_nchw.shape
    hidden, c_out = w1.shape[0], w2.shape[0]
    hw = H * W

    if matmul_dtype is None:
        compute_dtype = jnp.result_type(x_nchw.dtype, w1.dtype)
    else:
        compute_dtype = jnp.dtype(matmul_dtype)
    gelu_dtype = _gelu_dtype(compute_dtype)

    h_chunk, n_chunks = _pick_hidden_chunk(hidden)
    vmem_limit = _vmem_limit_bytes()
    tile = _pick_tile_hw(
        N, hw, c_in, hidden, c_out, h_chunk,
        jnp.dtype(x_nchw.dtype).itemsize, jnp.dtype(w1.dtype).itemsize,
        vmem_limit, 1 if single_buffer_weights else 2)

    x = x_nchw.reshape(N, c_in, hw)       # free row-major view, no transpose

    resident_kwargs = (dict(pipeline_mode=pl.Buffered(1))
                       if single_buffer_weights else {})

    def resident(shape):                  # weights/biases stay put in VMEM
        return pl.BlockSpec(shape, lambda n, j: (0,) * len(shape),
                            **resident_kwargs)

    out = pl.pallas_call(
        _make_kernel(h_chunk, n_chunks, compute_dtype, gelu_dtype),
        out_shape=jax.ShapeDtypeStruct((N, c_out, hw), x_nchw.dtype),
        grid=(N, pl.cdiv(hw, tile)),
        in_specs=[
            pl.BlockSpec((1, c_in, tile), lambda n, j: (n, 0, j)),
            resident((hidden, c_in)),
            resident((hidden, 1)),
            resident((c_out, hidden)),
            resident((c_out, 1)),
        ],
        out_specs=pl.BlockSpec((1, c_out, tile), lambda n, j: (n, 0, j)),
        compiler_params=pltpu.CompilerParams(
            dimension_semantics=("parallel", "parallel"),
            vmem_limit_bytes=vmem_limit,
        ),
    )(x, w1, b1, w2, b2)

    return out.reshape(N, c_out, H, W)


def mlp2d_forward(params, x_nchw, *, matmul_dtype=None):
    """MLP2d forward: x (N, C_in, H, W) -> (N, C_out, H, W).

    matmul_dtype=jnp.bfloat16 forces the fast bf16 MXU path even for f32
    inputs (small, explicit precision trade); by default the matmuls run in
    the input/param dtype (bf16 inputs take the fast path automatically).
    """
    try:
        return _mlp2d_forward_impl(params, x_nchw, single_buffer_weights=True,
                                   matmul_dtype=matmul_dtype)
    except Exception:
        # pipeline_mode=pl.Buffered(1) not supported by this JAX/Mosaic build:
        # retry with default double-buffered resident weights (smaller tile).
        return _mlp2d_forward_impl(params, x_nchw, single_buffer_weights=False,
                                   matmul_dtype=matmul_dtype)


# ----------------------------------------------------------------------------
# Parameter init (same shapes/semantics as the PyTorch 1x1 Conv2d layers) and
# a pure-JAX reference used to validate the Pallas lowering.
# ----------------------------------------------------------------------------
def init_mlp2d(key, in_features, hidden_features, out_features,
               dtype=jnp.float32):
    k1, k2, k3, k4 = jax.random.split(key, 4)
    s1 = 1.0 / math.sqrt(in_features)
    s2 = 1.0 / math.sqrt(hidden_features)
    return dict(
        w1=jax.random.uniform(k1, (hidden_features, in_features),
                              jnp.float32, -s1, s1).astype(dtype),
        b1=jax.random.uniform(k2, (hidden_features, 1),
                              jnp.float32, -s1, s1).astype(dtype),
        w2=jax.random.uniform(k3, (out_features, hidden_features),
                              jnp.float32, -s2, s2).astype(dtype),
        b2=jax.random.uniform(k4, (out_features, 1),
                              jnp.float32, -s2, s2).astype(dtype),
    )


def _mlp2d_ref(params, x_nchw):
    N, c_in, H, W = x_nchw.shape
    x = x_nchw.reshape(N, c_in, H * W).astype(jnp.float32)
    h = jnp.einsum('hc,ncl->nhl', params["w1"].astype(jnp.float32), x)
    h = h + params["b1"].astype(jnp.float32)[None]
    h = jax.nn.gelu(h, approximate=False)                 # exact GELU
    o = jnp.einsum('oh,nhl->nol', params["w2"].astype(jnp.float32), h)
    o = o + params["b2"].astype(jnp.float32)[None]
    return o.reshape(N, -1, H, W).astype(x_nchw.dtype)


if __name__ == "__main__":
    key = jax.random.PRNGKey(0)
    kp, kx, kx2 = jax.random.split(key, 3)

    # Small shapes consistent with the module: batch=2, in=4, hidden=32, out=4, 16x16.
    N, C_IN, HIDDEN, C_OUT, H, W = 2, 4, 32, 4, 16, 16
    params = init_mlp2d(kp, C_IN, HIDDEN, C_OUT)
    x = jax.random.normal(kx, (N, C_IN, H, W), jnp.float32)

    out = jax.block_until_ready(mlp2d_forward(params, x))
    assert out.shape == (N, C_OUT, H, W), out.shape
    assert bool(jnp.all(jnp.isfinite(out)))
    ref = _mlp2d_ref(params, x)
    assert bool(jnp.allclose(out, ref, atol=2e-2, rtol=2e-2)), \
        float(jnp.max(jnp.abs(out - ref)))

    # Spatial size not a multiple of 128 exercises the masked ragged last
    # tile (no jnp.pad / output-slice HBM round trips anymore).
    x2 = jax.random.normal(kx2, (N, C_IN, 10, 10), jnp.float32)
    out2 = jax.block_until_ready(mlp2d_forward(params, x2))
    assert out2.shape == (N, C_OUT, 10, 10), out2.shape
    ref2 = _mlp2d_ref(params, x2)
    assert bool(jnp.allclose(out2, ref2, atol=2e-2, rtol=2e-2)), \
        float(jnp.max(jnp.abs(out2 - ref2)))

    # bf16 params/activations take the bf16 MXU (and, on v6e/v7x, bf16
    # VPU/EUP elementwise) fast path.
    params_bf = jax.tree_util.tree_map(lambda p: p.astype(jnp.bfloat16), params)
    x_bf = x.astype(jnp.bfloat16)
    out_bf = jax.block_until_ready(mlp2d_forward(params_bf, x_bf))
    assert out_bf.shape == (N, C_OUT, H, W) and out_bf.dtype == jnp.bfloat16
    ref_bf = _mlp2d_ref(params_bf, x_bf)
    assert bool(jnp.allclose(out_bf.astype(jnp.float32),
                             ref_bf.astype(jnp.float32),
                             atol=1e-1, rtol=1e-1)), \
        float(jnp.max(jnp.abs(out_bf.astype(jnp.float32) -
                              ref_bf.astype(jnp.float32))))

    print("KERNEL_OK")
</pallas_src>

<mosaic_0001>
module attributes {stable_mosaic.version = 11 : i64} {
  func.func @kernel(%arg0: i32, %arg1: i32, %arg2: memref<1x4x256xf32, #tpu.memory_space<vmem>>, %arg3: memref<32x4xf32, #tpu.memory_space<vmem>>, %arg4: memref<32x1xf32, #tpu.memory_space<vmem>>, %arg5: memref<4x32xf32, #tpu.memory_space<vmem>>, %arg6: memref<4x1xf32, #tpu.memory_space<vmem>>, %arg7: memref<1x4x256xf32, #tpu.memory_space<vmem>>) attributes {dimension_semantics = [#tpu.dimension_semantics<parallel>, #tpu.dimension_semantics<parallel>], iteration_bounds = array<i64: 2, 1>, scalar_prefetch = 0 : i64, scratch_operands = 0 : i64, tpu.core_type = #tpu.core_type<tc>, window_params = [{transform_indices = @transform_0, window_bounds = array<i64: 1, 4, 256>}, {pipeline_mode = #tpu.pipeline_mode<synchronous>, transform_indices = @transform_1, window_bounds = array<i64: 32, 4>}, {pipeline_mode = #tpu.pipeline_mode<synchronous>, transform_indices = @transform_2, window_bounds = array<i64: 32, 1>}, {pipeline_mode = #tpu.pipeline_mode<synchronous>, transform_indices = @transform_3, window_bounds = array<i64: 4, 32>}, {pipeline_mode = #tpu.pipeline_mode<synchronous>, transform_indices = @transform_4, window_bounds = array<i64: 4, 1>}, {transform_indices = @transform_5, window_bounds = array<i64: 1, 4, 256>}]} {
    %c0 = arith.constant 0 : index
    %c0_0 = arith.constant 0 : index
    %c0_1 = arith.constant 0 : index
    %0 = vector.load %arg2[%c0, %c0_0, %c0_1] : memref<1x4x256xf32, #tpu.memory_space<vmem>>, vector<1x4x256xf32>
    %1 = vector.shape_cast %0 : vector<1x4x256xf32> to vector<4x256xf32>
    %c0_2 = arith.constant 0 : index
    %c0_3 = arith.constant 0 : index
    %2 = vector.load %arg3[%c0_2, %c0_3] : memref<32x4xf32, #tpu.memory_space<vmem>>, vector<32x4xf32>
    %cst = arith.constant dense<0.000000e+00> : vector<32x256xf32>
    %3 = tpu.matmul %2, %1, %cst {dimension_numbers = #tpu.dot_dimension_numbers<[1], [0], [0], [1], [0, 0, 1, 1], [], []>} : vector<32x4xf32>, vector<4x256xf32>, vector<32x256xf32> -> vector<32x256xf32>
    %c0_4 = arith.constant 0 : index
    %c0_5 = arith.constant 0 : index
    %4 = vector.load %arg4[%c0_4, %c0_5] : memref<32x1xf32, #tpu.memory_space<vmem>>, vector<32x1xf32>
    %5 = vector.broadcast %4 : vector<32x1xf32> to vector<32x256xf32>
    %6 = arith.addf %3, %5 : vector<32x256xf32>
    %cst_6 = arith.constant 5.000000e-01 : f32
    %7 = vector.broadcast %cst_6 : f32 to vector<32x256xf32>
    %8 = arith.mulf %7, %6 : vector<32x256xf32>
    %cst_7 = arith.constant 0.707106769 : f32
    %9 = vector.broadcast %cst_7 : f32 to vector<32x256xf32>
    %10 = arith.mulf %6, %9 : vector<32x256xf32>
    %cst_8 = arith.constant 0.000000e+00 : f32
    %11 = vector.broadcast %cst_8 : f32 to vector<32x256xf32>
    %12 = arith.cmpf oge, %10, %11 : vector<32x256xf32>
    %cst_9 = arith.constant 1.000000e+00 : f32
    %cst_10 = arith.constant -1.000000e+00 : f32
    %13 = vector.broadcast %cst_9 : f32 to vector<32x256xf32>
    %14 = vector.broadcast %cst_10 : f32 to vector<32x256xf32>
    %15 = arith.select %12, %13, %14 : vector<32x256xi1>, vector<32x256xf32>
    %16 = math.absf %10 : vector<32x256xf32>
    %cst_11 = arith.constant 0.327591091 : f32
    %17 = vector.broadcast %cst_11 : f32 to vector<32x256xf32>
    %18 = arith.mulf %17, %16 : vector<32x256xf32>
    %cst_12 = arith.constant 1.000000e+00 : f32
    %19 = vector.broadcast %cst_12 : f32 to vector<32x256xf32>
    %20 = arith.addf %19, %18 : vector<32x256xf32>
    %21 = tpu.reciprocal %20 {approx = true} : vector<32x256xf32> -> vector<32x256xf32>
    %cst_13 = arith.constant 1.06140542 : f32
    %22 = vector.broadcast %cst_13 : f32 to vector<32x256xf32>
    %23 = arith.mulf %22, %21 : vector<32x256xf32>
    %cst_14 = arith.constant -1.45315206 : f32
    %24 = vector.broadcast %cst_14 : f32 to vector<32x256xf32>
    %25 = arith.addf %23, %24 : vector<32x256xf32>
    %26 = arith.mulf %25, %21 : vector<32x256xf32>
    %cst_15 = arith.constant 1.42141378 : f32
    %27 = vector.broadcast %cst_15 : f32 to vector<32x256xf32>
    %28 = arith.addf %26, %27 : vector<32x256xf32>
    %29 = arith.mulf %28, %21 : vector<32x256xf32>
    %cst_16 = arith.constant -0.284496725 : f32
    %30 = vector.broadcast %cst_16 : f32 to vector<32x256xf32>
    %31 = arith.addf %29, %30 : vector<32x256xf32>
    %32 = arith.mulf %31, %21 : vector<32x256xf32>
    %cst_17 = arith.constant 0.254829586 : f32
    %33 = vector.broadcast %cst_17 : f32 to vector<32x256xf32>
    %34 = arith.addf %32, %33 : vector<32x256xf32>
    %35 = arith.mulf %34, %21 : vector<32x256xf32>
    %cst_18 = arith.constant 0.000000e+00 : f32
    %36 = vector.broadcast %cst_18 : f32 to vector<32x256xf32>
    %37 = arith.subf %36, %16 : vector<32x256xf32>
    %38 = arith.mulf %37, %16 : vector<32x256xf32>
    %39 = math.exp %38 : vector<32x256xf32>
    %40 = arith.mulf %35, %39 : vector<32x256xf32>
    %cst_19 = arith.constant 1.000000e+00 : f32
    %41 = vector.broadcast %cst_19 : f32 to vector<32x256xf32>
    %42 = arith.subf %41, %40 : vector<32x256xf32>
    %43 = arith.mulf %15, %42 : vector<32x256xf32>
    %cst_20 = arith.constant 1.000000e+00 : f32
    %44 = vector.broadcast %cst_20 : f32 to vector<32x256xf32>
    %45 = arith.addf %44, %43 : vector<32x256xf32>
    %46 = arith.mulf %8, %45 : vector<32x256xf32>
    %c0_21 = arith.constant 0 : index
    %c0_22 = arith.constant 0 : index
    %47 = vector.load %arg5[%c0_21, %c0_22] : memref<4x32xf32, #tpu.memory_space<vmem>>, vector<4x32xf32>
    %cst_23 = arith.constant dense<0.000000e+00> : vector<4x256xf32>
    %48 = tpu.matmul %47, %46, %cst_23 {dimension_numbers = #tpu.dot_dimension_numbers<[1], [0], [0], [1], [0, 0, 1, 1], [], []>} : vector<4x32xf32>, vector<32x256xf32>, vector<4x256xf32> -> vector<4x256xf32>
    %c0_24 = arith.constant 0 : index
    %c0_25 = arith.constant 0 : index
    %49 = vector.load %arg6[%c0_24, %c0_25] : memref<4x1xf32, #tpu.memory_space<vmem>>, vector<4x1xf32>
    %50 = vector.broadcast %49 : vector<4x1xf32> to vector<4x256xf32>
    %51 = arith.addf %48, %50 : vector<4x256xf32>
    %c0_26 = arith.constant 0 : index
    %c0_27 = arith.constant 0 : index
    %c0_28 = arith.constant 0 : index
    %52 = vector.load %arg7[%c0_26, %c0_27, %c0_28] : memref<1x4x256xf32, #tpu.memory_space<vmem>>, vector<1x4x256xf32>
    %53 = vector.shape_cast %52 : vector<1x4x256xf32> to vector<4x256xf32>
    %54 = vector.shape_cast %51 : vector<4x256xf32> to vector<1x4x256xf32>
    tpu.vector_store %arg7[%c0_26, %c0_27, %c0_28], %54 {strides = array<i32>} : memref<1x4x256xf32, #tpu.memory_space<vmem>>, vector<1x4x256xf32>,
    return
  }
  func.func @transform_0(%arg0: i32, %arg1: i32) -> (i32, i32, i32) {
    %c0_i32 = arith.constant 0 : i32
    %c0_i32_0 = arith.constant 0 : i32
    return %arg0, %c0_i32, %arg1 : i32, i32, i32
  }
  func.func @transform_1(%arg0: i32, %arg1: i32) -> (i32, i32) {
    %c0_i32 = arith.constant 0 : i32
    %c0_i32_0 = arith.constant 0 : i32
    %c0_i32_1 = arith.constant 0 : i32
    return %c0_i32, %c0_i32_0 : i32, i32
  }
  func.func @transform_2(%arg0: i32, %arg1: i32) -> (i32, i32) {
    %c0_i32 = arith.constant 0 : i32
    %c0_i32_0 = arith.constant 0 : i32
    %c0_i32_1 = arith.constant 0 : i32
    return %c0_i32, %c0_i32_0 : i32, i32
  }
  func.func @transform_3(%arg0: i32, %arg1: i32) -> (i32, i32) {
    %c0_i32 = arith.constant 0 : i32
    %c0_i32_0 = arith.constant 0 : i32
    %c0_i32_1 = arith.constant 0 : i32
    return %c0_i32, %c0_i32_0 : i32, i32
  }
  func.func @transform_4(%arg0: i32, %arg1: i32) -> (i32, i32) {
    %c0_i32 = arith.constant 0 : i32
    %c0_i32_0 = arith.constant 0 : i32
    %c0_i32_1 = arith.constant 0 : i32
    return %c0_i32, %c0_i32_0 : i32, i32
  }
  func.func @transform_5(%arg0: i32, %arg1: i32) -> (i32, i32, i32) {
    %c0_i32 = arith.constant 0 : i32
    %c0_i32_0 = arith.constant 0 : i32
    return %arg0, %c0_i32, %arg1 : i32, i32, i32
  }
}

module attributes {stable_mosaic.version = 11 : i64} {
  func.func @kernel(%arg0: i32, %arg1: i32, %arg2: memref<1x4x256xf32, #tpu.memory_space<vmem>>, %arg3: memref<32x4xf32, #tpu.memory_space<vmem>>, %arg4: memref<32x1xf32, #tpu.memory_space<vmem>>, %arg5: memref<4x32xf32, #tpu.memory_space<vmem>>, %arg6: memref<4x1xf32, #tpu.memory_space<vmem>>, %arg7: memref<1x4x256xf32, #tpu.memory_space<vmem>>) attributes {dimension_semantics = [#tpu.dimension_semantics<parallel>, #tpu.dimension_semantics<parallel>], iteration_bounds = array<i64: 2, 1>, scalar_prefetch = 0 : i64, scratch_operands = 0 : i64, tpu.core_type = #tpu.core_type<tc>, window_params = [{transform_indices = @transform_0, window_bounds = array<i64: 1, 4, 256>}, {pipeline_mode = #tpu.pipeline_mode<synchronous>, transform_indices = @transform_1, window_bounds = array<i64: 32, 4>}, {pipeline_mode = #tpu.pipeline_mode<synchronous>, transform_indices = @transform_2, window_bounds = array<i64: 32, 1>}, {pipeline_mode = #tpu.pipeline_mode<synchronous>, transform_indices = @transform_3, window_bounds = array<i64: 4, 32>}, {pipeline_mode = #tpu.pipeline_mode<synchronous>, transform_indices = @transform_4, window_bounds = array<i64: 4, 1>}, {transform_indices = @transform_5, window_bounds = array<i64: 1, 4, 256>}]} {
    %c0 = arith.constant 0 : index
    %c0_0 = arith.constant 0 : index
    %c0_1 = arith.constant 0 : index
    %0 = vector.load %arg2[%c0, %c0_0, %c0_1] : memref<1x4x256xf32, #tpu.memory_space<vmem>>, vector<1x4x256xf32>
    %1 = vector.shape_cast %0 : vector<1x4x256xf32> to vector<4x256xf32>
    %c0_2 = arith.constant 0 : index
    %c0_3 = arith.constant 0 : index
    %2 = vector.load %arg3[%c0_2, %c0_3] : memref<32x4xf32, #tpu.memory_space<vmem>>, vector<32x4xf32>
    %cst = arith.constant dense<0.000000e+00> : vector<32x256xf32>
    %3 = tpu.matmul %2, %1, %cst {dimension_numbers = #tpu.dot_dimension_numbers<[1], [0], [0], [1], [0, 0, 1, 1], [], []>} : vector<32x4xf32>, vector<4x256xf32>, vector<32x256xf32> -> vector<32x256xf32>
    %c0_4 = arith.constant 0 : index
    %c0_5 = arith.constant 0 : index
    %4 = vector.load %arg4[%c0_4, %c0_5] : memref<32x1xf32, #tpu.memory_space<vmem>>, vector<32x1xf32>
    %5 = vector.broadcast %4 : vector<32x1xf32> to vector<32x256xf32>
    %6 = arith.addf %3, %5 : vector<32x256xf32>
    %cst_6 = arith.constant 5.000000e-01 : f32
    %7 = vector.broadcast %cst_6 : f32 to vector<32x256xf32>
    %8 = arith.mulf %7, %6 : vector<32x256xf32>
    %cst_7 = arith.constant 0.707106769 : f32
    %9 = vector.broadcast %cst_7 : f32 to vector<32x256xf32>
    %10 = arith.mulf %6, %9 : vector<32x256xf32>
    %cst_8 = arith.constant 0.000000e+00 : f32
    %11 = vector.broadcast %cst_8 : f32 to vector<32x256xf32>
    %12 = arith.cmpf oge, %10, %11 : vector<32x256xf32>
    %cst_9 = arith.constant 1.000000e+00 : f32
    %cst_10 = arith.constant -1.000000e+00 : f32
    %13 = vector.broadcast %cst_9 : f32 to vector<32x256xf32>
    %14 = vector.broadcast %cst_10 : f32 to vector<32x256xf32>
    %15 = arith.select %12, %13, %14 : vector<32x256xi1>, vector<32x256xf32>
    %16 = math.absf %10 : vector<32x256xf32>
    %cst_11 = arith.constant 0.327591091 : f32
    %17 = vector.broadcast %cst_11 : f32 to vector<32x256xf32>
    %18 = arith.mulf %17, %16 : vector<32x256xf32>
    %cst_12 = arith.constant 1.000000e+00 : f32
    %19 = vector.broadcast %cst_12 : f32 to vector<32x256xf32>
    %20 = arith.addf %19, %18 : vector<32x256xf32>
    %21 = tpu.reciprocal %20 {approx = true} : vector<32x256xf32> -> vector<32x256xf32>
    %cst_13 = arith.constant 1.06140542 : f32
    %22 = vector.broadcast %cst_13 : f32 to vector<32x256xf32>
    %23 = arith.mulf %22, %21 : vector<32x256xf32>
    %cst_14 = arith.constant -1.45315206 : f32
    %24 = vector.broadcast %cst_14 : f32 to vector<32x256xf32>
    %25 = arith.addf %23, %24 : vector<32x256xf32>
    %26 = arith.mulf %25, %21 : vector<32x256xf32>
    %cst_15 = arith.constant 1.42141378 : f32
    %27 = vector.broadcast %cst_15 : f32 to vector<32x256xf32>
    %28 = arith.addf %26, %27 : vector<32x256xf32>
    %29 = arith.mulf %28, %21 : vector<32x256xf32>
    %cst_16 = arith.constant -0.284496725 : f32
    %30 = vector.broadcast %cst_16 : f32 to vector<32x256xf32>
    %31 = arith.addf %29, %30 : vector<32x256xf32>
    %32 = arith.mulf %31, %21 : vector<32x256xf32>
    %cst_17 = arith.constant 0.254829586 : f32
    %33 = vector.broadcast %cst_17 : f32 to vector<32x256xf32>
    %34 = arith.addf %32, %33 : vector<32x256xf32>
    %35 = arith.mulf %34, %21 : vector<32x256xf32>
    %cst_18 = arith.constant 0.000000e+00 : f32
    %36 = vector.broadcast %cst_18 : f32 to vector<32x256xf32>
    %37 = arith.subf %36, %16 : vector<32x256xf32>
    %38 = arith.mulf %37, %16 : vector<32x256xf32>
    %39 = math.exp %38 : vector<32x256xf32>
    %40 = arith.mulf %35, %39 : vector<32x256xf32>
    %cst_19 = arith.constant 1.000000e+00 : f32
    %41 = vector.broadcast %cst_19 : f32 to vector<32x256xf32>
    %42 = arith.subf %41, %40 : vector<32x256xf32>
    %43 = arith.mulf %15, %42 : vector<32x256xf32>
    %cst_20 = arith.constant 1.000000e+00 : f32
    %44 = vector.broadcast %cst_20 : f32 to vector<32x256xf32>
    %45 = arith.addf %44, %43 : vector<32x256xf32>
    %46 = arith.mulf %8, %45 : vector<32x256xf32>
    %c0_21 = arith.constant 0 : index
    %c0_22 = arith.constant 0 : index
    %47 = vector.load %arg5[%c0_21, %c0_22] : memref<4x32xf32, #tpu.memory_space<vmem>>, vector<4x32xf32>
    %cst_23 = arith.constant dense<0.000000e+00> : vector<4x256xf32>
    %48 = tpu.matmul %47, %46, %cst_23 {dimension_numbers = #tpu.dot_dimension_numbers<[1], [0], [0], [1], [0, 0, 1, 1], [], []>} : vector<4x32xf32>, vector<32x256xf32>, vector<4x256xf32> -> vector<4x256xf32>
    %c0_24 = arith.constant 0 : index
    %c0_25 = arith.constant 0 : index
    %49 = vector.load %arg6[%c0_24, %c0_25] : memref<4x1xf32, #tpu.memory_space<vmem>>, vector<4x1xf32>
    %50 = vector.broadcast %49 : vector<4x1xf32> to vector<4x256xf32>
    %51 = arith.addf %48, %50 : vector<4x256xf32>
    %c0_26 = arith.constant 0 : index
    %c0_27 = arith.constant 0 : index
    %c0_28 = arith.constant 0 : index
    %52 = vector.load %arg7[%c0_26, %c0_27, %c0_28] : memref<1x4x256xf32, #tpu.memory_space<vmem>>, vector<1x4x256xf32>
    %53 = vector.shape_cast %52 : vector<1x4x256xf32> to vector<4x256xf32>
    %54 = vector.shape_cast %51 : vector<4x256xf32> to vector<1x4x256xf32>
    tpu.vector_store %arg7[%c0_26, %c0_27, %c0_28], %54 {strides = array<i32>} : memref<1x4x256xf32, #tpu.memory_space<vmem>>, vector<1x4x256xf32>,
    return
  }
  func.func @transform_0(%arg0: i32, %arg1: i32) -> (i32, i32, i32) {
    %c0_i32 = arith.constant 0 : i32
    %c0_i32_0 = arith.constant 0 : i32
    return %arg0, %c0_i32, %arg1 : i32, i32, i32
  }
  func.func @transform_1(%arg0: i32, %arg1: i32) -> (i32, i32) {
    %c0_i32 = arith.constant 0 : i32
    %c0_i32_0 = arith.constant 0 : i32
    %c0_i32_1 = arith.constant 0 : i32
    return %c0_i32, %c0_i32_0 : i32, i32
  }
  func.func @transform_2(%arg0: i32, %arg1: i32) -> (i32, i32) {
    %c0_i32 = arith.constant 0 : i32
    %c0_i32_0 = arith.constant 0 : i32
    %c0_i32_1 = arith.constant 0 : i32
    return %c0_i32, %c0_i32_0 : i32, i32
  }
  func.func @transform_3(%arg0: i32, %arg1: i32) -> (i32, i32) {
    %c0_i32 = arith.constant 0 : i32
    %c0_i32_0 = arith.constant 0 : i32
    %c0_i32_1 = arith.constant 0 : i32
    return %c0_i32, %c0_i32_0 : i32, i32
  }
  func.func @transform_4(%arg0: i32, %arg1: i32) -> (i32, i32) {
    %c0_i32 = arith.constant 0 : i32
    %c0_i32_0 = arith.constant 0 : i32
    %c0_i32_1 = arith.constant 0 : i32
    return %c0_i32, %c0_i32_0 : i32, i32
  }
  func.func @transform_5(%arg0: i32, %arg1: i32) -> (i32, i32, i32) {
    %c0_i32 = arith.constant 0 : i32
    %c0_i32_0 = arith.constant 0 : i32
    return %arg0, %c0_i32, %arg1 : i32, i32, i32
  }
}

</mosaic_0001>

<bundles_post_ra>
// kernel: _mlp2d_forward_impl.1
= control target key start
LH: loop header
LB: loop body
LE: loop exit
PB: predicated region body
PF: predicated region fallthrough
CT: control target
= control target key end

     0   :  { %s923_s18 = smov 0   ;;  %s925_s19 = smov 0   ;;  %s1131_s0 = inlined_call_operand.vmem [shape: f32[2,4,256], index: 0, kind: input, shape index: {}]   ;;  %s1132_s1 = inlined_call_operand.vmem [shape: f32[32,4], index: 1, kind: input, shape index: {}]   ;;  %s1133_s2 = inlined_call_operand.vmem [shape: f32[32,1], index: 2, kind: input, shape index: {}]   ;;  %s1134_s3 = inlined_call_operand.vmem [shape: f32[4,32], index: 3, kind: input, shape index: {}]   ;;  %s1135_s4 = inlined_call_operand.vmem [shape: f32[4,1], index: 4, kind: input, shape index: {}]   ;;  %s1136_s5 = inlined_call_operand.vmem [shape: f32[2,4,256], index: 5, kind: output, shape index: {}]  }
   0x1   :  { %s927_s20 = smov 0  }
   0x2 LB: > { %s27_s21 = sadd.s32 1, %s884_s19  ;;  %p788_p0 = scmp.ge.s32.totalorder %s888_s20, 1  ;;  %s888_s20 = sphi %s927_s20, %s15_s20   ;;  %s884_s19 = sphi %s925_s19, %s1138_s19   ;;  %s880_s18 = sphi %s923_s18, %s1137_s18  }
   0x3   : > { %p29_p1 = scmp.ge.s32.totalorder %s27_s21, 2  ;;  %p208_p2 = scmp.lt.s32.totalorder %s888_s20, 3 }
   0x5   : > { %s1140_s21 = smov (%p29_p1, %s27_s21), 0  ;;  %p209_p3 = pnand %p788_p0, %p208_p2 }
   0x6   : > { %p245_p4 = scmp.lt.s32.totalorder (!%p209_p3), %s880_s18, 1 }
   0x7   : > { %212 = sbr.rel (%p209_p3) target bundleno = 488 (0x1e8), region = 40 }
   0xc   : > { %v890_v0 = vmov 0.0   ;;  %v270_v1 = vld [vmem:[%s1133_s2 + $0x8] sm:$0xff]  ;;  %s1142_s18 = smov (!%p245_p4, %s880_s18), 1  ;;  %v891_v2 = vmov 0   ;;  %v272_v3 = vld [vmem:[%s1133_s2 + $0x18] sm:$0xff]  ;;  %v269_v4 = vld [vmem:[%s1133_s2] sm:$0xff] }
   0xd   : > { %377 = vmatprep.mubr.f32.mxu0 %v890_v0  ;;  %685 = vmatprep.mubr.f32.mxu1 %v890_v0  ;;  %s802_s26 = sshll.u32 %s1142_s18, 3  ;;  %v271_v5 = vld [vmem:[%s1133_s2 + $0x10] sm:$0xff]  ;;  %vm308_vm0 = vcmask 1043456   ;;  %v265_v8 = vld [vmem:[%s1132_s1] sm:$0xff]  ;;  %vm295_vm1 = vcmask 31744   ;;  %v266_v10 = vld [vmem:[%s1132_s1 + $0x8] sm:$0xff] }
   0xe   : > { %832 = vset.pattern.permute.xlu1 %v891_v2  ;;  %831 = vset.pattern.permute.xlu0 %v891_v2  ;;  %s252_s8 = scalar_lea.vmem %s1131_s0, %s802_s26  ;;  %v611_v9 = vld [vmem:[%s1135_s4] sm:$0xf]  ;;  %v267_v11 = vld [vmem:[%s1132_s1 + $0x10] sm:$0xff]  ;;  %v268_v12 = vld [vmem:[%s1132_s1 + $0x18] sm:$0xff]  ;;  %vm617_vm10 = vcmask 261120   ;;  %s262_s28 = scalar_lea.vmem %s1136_s5, %s802_s26 }
   0xf   : > { %280 = vperm.xlu1 %832, %v270_v1   ;;  %290 = vperm.xlu0 %831, %v272_v3   ;;  %v264_v6 = vld [vmem:[%s252_s8] sm:$0xff] }
  0x10   : > { %v294_v7 = vcombine.high %v264_v6, %v264_v6 }
  0x12   : > { %793 = vmatprep.subr.msk.mxu0 %vm308_vm0, %v294_v7 }
  0x13   : > { %275 = vperm.xlu1 %832, %v269_v4   ;;  %285 = vperm.xlu0 %831, %v271_v5  }
  0x14   : > { %794 = vmatpush1.msk.msra.mxu0 %vm308_vm0, %v264_v6 }
  0x15   : > { %795 = vmatmul.mubr.msk.f32.vlgmr.msra.gmra.mxu0 %vm295_vm1, %v265_v8 }
  0x16   : > { %383 = vmatprep.mubr.f32.mxu0 %v890_v0 }
  0x17   : > { %614 = vperm.xlu0 %831, %v611_v9  }
  0x19   : > { %796 = vmatmul.mubr.msk.f32.gmra.mxu0 %vm295_vm1, %v266_v10 }
  0x1a   : > { %389 = vmatprep.mubr.f32.mxu0 %v890_v0 }
  0x1d   : > { %797 = vmatmul.mubr.msk.f32.gmra.mxu0 %vm295_vm1, %v267_v11 }
  0x1e   : > { %395 = vmatprep.mubr.f32.mxu0 %v890_v0 }
  0x21   : > { %798 = vmatmul.mubr.msk.f32.gmra.mxu0 %vm295_vm1, %v268_v12 }
  0x8a   : > { %v281_v13 = vpop.permute.xlu1 %280  ;;  %v291_v23 = vpop.permute.xlu0 %290 }
  0x8e   : > { %v276_v14 = vpop.permute.xlu1 %275  ;;  %v286_v37 = vpop.permute.xlu0 %285 }
  0xd5   : > { %v379_v15 = vpop.f32.mrf.mxu0 }
  0xd6   : > { %v976_v16 = vadd.f32 %v379_v15, %v276_v14 }
  0xd7   : > { %v381_v17 = vpop.f32.mrf.mxu0 }
  0xd8   : > { %v979_v18 = vmul.f32 0.70710677, %v976_v16  ;;  %v981_v19 = vadd.f32 %v381_v17, %v276_v14 }
  0xd9   : > { %v385_v20 = vpop.f32.mrf.mxu0 }
  0xda   : > { %v984_v21 = vand.u32 2147483647, %v979_v18  ;;  %v987_v22 = vmul.f32 0.70710677, %v981_v19  ;;  %v989_v24 = vadd.f32 %v385_v20, %v281_v13  ;;  %vm418_vm2 = vcmp.ge.f32.partialorder %v979_v18, 0.0 }
  0xdb   : > { %v387_v25 = vpop.f32.mrf.mxu0 }
  0xdc   : > { %v442_v26 = vmul.f32 0.3275911, %v984_v21  ;;  %v993_v27 = vand.u32 2147483647, %v987_v22  ;;  %v996_v28 = vmul.f32 0.70710677, %v989_v24  ;;  %v998_v29 = vadd.f32 %v387_v25, %v281_v13 }
  0xdd   : > { %v391_v30 = vpop.f32.mrf.mxu0  ;;  %v538_v10 = vsub.f32 0.0, %v984_v21  ;;  %vm419_vm3 = vcmp.ge.f32.partialorder %v987_v22, 0.0 }
  0xde   : > { %v450_v31 = vadd.f32 1.0, %v442_v26  ;;  %v443_v32 = vmul.f32 0.3275911, %v993_v27  ;;  %v436_v33 = vand.u32 2147483647, %v996_v28  ;;  %v1006_v41 = vadd.f32 %v391_v30, %v286_v37 }
  0xdf   : > { %v1003_v34 = vmul.f32 0.70710677, %v998_v29  ;;  %v393_v35 = vpop.f32.mrf.mxu0  ;;  %v546_v30 = vmul.f32 %v538_v10, %v984_v21  ;;  %vm420_vm9 = vcmp.ge.f32.partialorder %v996_v28, 0.0 }
  0xe0   : > { %v451_v36 = vadd.f32 1.0, %v443_v32  ;;  %834 = vrcp.f32 %v450_v31  ;;  %v444_v38 = vmul.f32 0.3275911, %v436_v33  ;;  %v1008_v44 = vadd.f32 %v393_v35, %v286_v37 }
  0xe1   : > { %v437_v39 = vand.u32 2147483647, %v1003_v34  ;;  %v397_v42 = vpop.f32.mrf.mxu0  ;;  %v1011_v45 = vmul.f32 0.70710677, %v1006_v41  ;;  %v540_v2 = vsub.f32 0.0, %v436_v33  ;;  %vm421_vm4 = vcmp.ge.f32.partialorder %v1003_v34, 0.0 }
  0xe2   : > { %836 = vrcp.f32 %v451_v36  ;;  %v452_v40 = vadd.f32 1.0, %v444_v38  ;;  %v1014_v47 = vmul.f32 0.70710677, %v1008_v44  ;;  %v1017_v49 = vadd.f32 %v397_v42, %v291_v23 }
  0xe3   : > { %v445_v43 = vmul.f32 0.3275911, %v437_v39  ;;  %v438_v48 = vand.u32 2147483647, %v1011_v45  ;;  %v399_v50 = vpop.f32.mrf.mxu0  ;;  %v541_v6 = vsub.f32 0.0, %v437_v39  ;;  %v548_v13 = vmul.f32 %v540_v2, %v436_v33 }
  0xe4   : > { %838 = vrcp.f32 %v452_v40  ;;  %v439_v52 = vand.u32 2147483647, %v1014_v47  ;;  %v1021_v53 = vmul.f32 0.70710677, %v1017_v49  ;;  %v1023_v54 = vadd.f32 %v399_v50, %v291_v23 }
  0xe5   : > { %v453_v46 = vadd.f32 1.0, %v445_v43  ;;  %v446_v51 = vmul.f32 0.3275911, %v438_v48  ;;  %v542_v14 = vsub.f32 0.0, %v438_v48  ;;  %v549_v17 = vmul.f32 %v541_v6, %v437_v39 }
  0xe6   : > { %v447_v56 = vmul.f32 0.3275911, %v439_v52  ;;  %v440_v57 = vand.u32 2147483647, %v1021_v53  ;;  %v1027_v58 = vmul.f32 0.70710677, %v1023_v54 }
  0xe7   : > { %840 = vrcp.f32 %v453_v46  ;;  %v454_v55 = vadd.f32 1.0, %v446_v51  ;;  %v543_v20 = vsub.f32 0.0, %v439_v52  ;;  %v539_v36 = vsub.f32 0.0, %v993_v27 }
  0xe8   : > { %v455_v59 = vadd.f32 1.0, %v447_v56  ;;  %v448_v61 = vmul.f32 0.3275911, %v440_v57  ;;  %v441_v62 = vand.u32 2147483647, %v1027_v58  ;;  %v544_v31 = vsub.f32 0.0, %v440_v57 }
  0xe9   : > { %842 = vrcp.f32 %v454_v55  ;;  %v558_v33 = vmul.f32 1.442695, %v548_v13  ;;  %v550_v37 = vmul.f32 %v542_v14, %v438_v48  ;;  %v560_v39 = vmul.f32 1.442695, %v549_v17 }
  0xea   : > { %844 = vrcp.f32 %v455_v59  ;;  %v456_v0 = vadd.f32 1.0, %v448_v61  ;;  %v449_v1 = vmul.f32 0.3275911, %v441_v62  ;;  %v551_v40 = vmul.f32 %v543_v20, %v439_v52 }
  0xeb   : > { %v545_v46 = vsub.f32 0.0, %v441_v62  ;;  %v554_v21 = vmul.f32 1.442695, %v546_v30  ;;  %v552_v55 = vmul.f32 %v544_v31, %v440_v57  ;;  %v562_v48 = vmul.f32 1.442695, %v550_v37 }
  0xec   : > { %846 = vrcp.f32 %v456_v0  ;;  %v457_v7 = vadd.f32 1.0, %v449_v1  ;;  %v547_v0 = vmul.f32 %v539_v36, %v993_v27  ;;  %v564_v2 = vmul.f32 1.442695, %v551_v40 }
  0xed   : > { %v1029_v60 = vpop.eup %834  ;;  %v553_v57 = vmul.f32 %v545_v46, %v441_v62  ;;  %vm424_vm5 = vcmp.ge.f32.partialorder %v1021_v53, 0.0  ;;  %vm423_vm6 = vcmp.ge.f32.partialorder %v1014_v47, 0.0  ;;  %vm422_vm7 = vcmp.ge.f32.partialorder %v1011_v45, 0.0 }
  0xee   : > { %v466_v4 = vmul.f32 1.0614054, %v1029_v60  ;;  %848 = vrcp.f32 %v457_v7  ;;  %v556_v13 = vmul.f32 1.442695, %v547_v0  ;;  %vm425_vm8 = vcmp.ge.f32.partialorder %v1027_v58, 0.0 }
  0xef   : > { %v1032_v63 = vpop.eup %836  ;;  %850 = vpow2.f32 %v558_v33  ;;  %v406_v18 = vmul.f32 0.5, %v1006_v41 }
  0xf0   : > { %v467_v3 = vmul.f32 1.0614054, %v1032_v63  ;;  %v474_v11 = vadd.f32 -1.4531521, %v466_v4  ;;  %852 = vpow2.f32 %v560_v39 }
  0xf1   : > { %v1036_v5 = vpop.eup %838  ;;  %854 = vpow2.f32 %v562_v48 }
  0xf2   : > { %v468_v8 = vmul.f32 1.0614054, %v1036_v5  ;;  %v475_v9 = vadd.f32 -1.4531521, %v467_v3  ;;  %v482_v35 = vmul.f32 %v1029_v60, %v474_v11  ;;  %856 = vpow2.f32 %v564_v2 }
  0xf4   : > { %v1040_v12 = vpop.eup %840  ;;  %v476_v15 = vadd.f32 -1.4531521, %v468_v8  ;;  %v483_v26 = vmul.f32 %v1032_v63, %v475_v9  ;;  %v490_v59 = vadd.f32 1.4214138, %v482_v35  ;;  %v566_v9 = vmul.f32 1.442695, %v552_v55 }
  0xf5   : > { %v469_v23 = vmul.f32 1.0614054, %v1040_v12 }
  0xf6   : > { %v484_v25 = vmul.f32 %v1036_v5, %v476_v15  ;;  %v1048_v38 = vpop.eup %842  ;;  %v491_v51 = vadd.f32 1.4214138, %v483_v26  ;;  %v498_v11 = vmul.f32 %v1029_v60, %v490_v59  ;;  %858 = vpow2.f32 %v566_v9 }
  0xf7   : > { %v477_v32 = vadd.f32 -1.4531521, %v469_v23  ;;  %v470_v50 = vmul.f32 1.0614054, %v1048_v38  ;;  %v1052_v61 = vpop.eup %844  ;;  %860 = vpow2.f32 %v556_v13 }
  0xf8   : > { %v492_v43 = vadd.f32 1.4214138, %v484_v25  ;;  %v471_v52 = vmul.f32 1.0614054, %v1052_v61  ;;  %v499_v8 = vmul.f32 %v1032_v63, %v491_v51  ;;  %v568_v25 = vmul.f32 1.442695, %v553_v57 }
  0xf9   : > { %v485_v42 = vmul.f32 %v1040_v12, %v477_v32  ;;  %v478_v1 = vadd.f32 -1.4531521, %v470_v50  ;;  %v1058_v6 = vpop.eup %846  ;;  %v506_v36 = vadd.f32 -0.28449672, %v498_v11  ;;  %862 = vpow2.f32 %v554_v21 }
  0xfa   : > { %v500_v4 = vmul.f32 %v1036_v5, %v492_v43  ;;  %v472_v27 = vmul.f32 1.0614054, %v1058_v6  ;;  %v479_v10 = vadd.f32 -1.4531521, %v471_v52  ;;  %v507_v31 = vadd.f32 -0.28449672, %v499_v8 }
  0xfb   : > { %v493_v56 = vadd.f32 1.4214138, %v485_v42  ;;  %v486_v7 = vmul.f32 %v1048_v38, %v478_v1  ;;  %v1064_v17 = vpop.eup %848  ;;  %864 = vpow2.f32 %v568_v25  ;;  %v514_v59 = vmul.f32 %v1029_v60, %v506_v36 }
  0xfc   : > { %v480_v20 = vadd.f32 -1.4531521, %v472_v27  ;;  %v487_v62 = vmul.f32 %v1052_v61, %v479_v10  ;;  %v508_v23 = vadd.f32 -0.28449672, %v500_v4  ;;  %v473_v26 = vmul.f32 1.0614054, %v1064_v17  ;;  %v851_v1 = vpop.eup %850 }
  0xfd   : > { %v501_v3 = vmul.f32 %v1040_v12, %v493_v56  ;;  %v494_v14 = vadd.f32 1.4214138, %v486_v7  ;;  %v515_v51 = vmul.f32 %v1032_v63, %v507_v31  ;;  %v853_v7 = vpop.eup %852  ;;  %v522_v10 = vadd.f32 0.2548296, %v514_v59 }
  0xfe   : > { %v488_v32 = vmul.f32 %v1058_v6, %v480_v20  ;;  %v495_v35 = vadd.f32 1.4214138, %v487_v62  ;;  %v481_v33 = vadd.f32 -1.4531521, %v473_v26  ;;  %v516_v43 = vmul.f32 %v1036_v5, %v508_v23 }
  0xff   : > { %v509_v15 = vadd.f32 -0.28449672, %v501_v3  ;;  %v502_v30 = vmul.f32 %v1048_v38, %v494_v14  ;;  %v523_v57 = vadd.f32 0.2548296, %v515_v51  ;;  %v855_v14 = vpop.eup %854 }
 0x100   : > { %v496_v40 = vadd.f32 1.4214138, %v488_v32  ;;  %v503_v42 = vmul.f32 %v1052_v61, %v495_v35  ;;  %v489_v46 = vmul.f32 %v1064_v17, %v481_v33  ;;  %v524_v3 = vadd.f32 0.2548296, %v516_v43  ;;  %v857_v23 = vpop.eup %856 }
 0x101   : > { %v510_v37 = vadd.f32 -0.28449672, %v502_v30  ;;  %v517_v39 = vmul.f32 %v1040_v12, %v509_v15  ;;  %v531_v26 = vmul.f32 %v1032_v63, %v523_v57 }
 0x102   : > { %v504_v55 = vmul.f32 %v1058_v6, %v496_v40  ;;  %v511_v56 = vadd.f32 -0.28449672, %v503_v42  ;;  %v497_v0 = vadd.f32 1.4214138, %v489_v46  ;;  %v532_v62 = vmul.f32 %v1036_v5, %v524_v3 }
 0x103   : > { %v518_v50 = vmul.f32 %v1048_v38, %v510_v37  ;;  %v525_v21 = vadd.f32 0.2548296, %v517_v39  ;;  %v859_v35 = vpop.eup %858 }
 0x104   : > { %v512_v2 = vadd.f32 -0.28449672, %v504_v55  ;;  %v519_v52 = vmul.f32 %v1052_v61, %v511_v56  ;;  %v505_v4 = vmul.f32 %v1064_v17, %v497_v0  ;;  %v861_v36 = vpop.eup %860  ;;  %v572_v63 = vmul.f32 %v851_v1, %v532_v62 }
 0x105   : > { %v526_v48 = vadd.f32 0.2548296, %v518_v50  ;;  %v533_v13 = vmul.f32 %v1040_v12, %v525_v21  ;;  %v571_v37 = vmul.f32 %v861_v36, %v531_v26  ;;  %v892_v50 = vmov -1.0  }
 0x106   : > { %v520_v8 = vmul.f32 %v1058_v6, %v512_v2  ;;  %v527_v9 = vadd.f32 0.2548296, %v519_v52  ;;  %v513_v11 = vadd.f32 -0.28449672, %v505_v4  ;;  %v863_v33 = vpop.eup %862  ;;  %v432_v51 = vsel %vm424_vm5, 1.0, %v892_v50 }
 0x107   : > { %v534_v27 = vmul.f32 %v1048_v38, %v526_v48  ;;  %v530_v38 = vmul.f32 %v1029_v60, %v522_v10  ;;  %v431_v47 = vsel %vm423_vm6, 1.0, %v892_v50  ;;  %v580_v56 = vsub.f32 1.0, %v572_v63 }
 0x108   : > { %v528_v15 = vadd.f32 0.2548296, %v520_v8  ;;  %v535_v20 = vmul.f32 %v1052_v61, %v527_v9  ;;  %v521_v25 = vmul.f32 %v1064_v17, %v513_v11  ;;  %v573_v61 = vmul.f32 %v853_v7, %v533_v13  ;;  %v865_v39 = vpop.eup %864 }
 0x109   : > { %v574_v32 = vmul.f32 %v855_v14, %v534_v27  ;;  %v570_v43 = vmul.f32 %v863_v33, %v530_v38  ;;  %v430_v59 = vsel %vm422_vm7, 1.0, %v892_v50  ;;  %v579_v45 = vsub.f32 1.0, %v571_v37 }
 0x10a   : > { %v536_v30 = vmul.f32 %v1058_v6, %v528_v15  ;;  %v575_v31 = vmul.f32 %v857_v23, %v535_v20  ;;  %v529_v12 = vadd.f32 0.2548296, %v521_v25  ;;  %v581_v55 = vsub.f32 1.0, %v573_v61 }
 0x10b   : > { %v582_v42 = vsub.f32 1.0, %v574_v32  ;;  %v429_v21 = vsel %vm421_vm4, 1.0, %v892_v50  ;;  %v433_v1 = vsel %vm425_vm8, 1.0, %v892_v50  ;;  %v578_v2 = vsub.f32 1.0, %v570_v43 }
 0x10c   : > { %v576_v5 = vmul.f32 %v859_v35, %v536_v30  ;;  %v537_v6 = vmul.f32 %v1064_v17, %v529_v12  ;;  %v583_v60 = vsub.f32 1.0, %v575_v31  ;;  %v428_v52 = vsel %vm420_vm9, 1.0, %v892_v50  ;;  %v615_v35 = vpop.permute.xlu0 %614 }
 0x10d   : > { %v590_v58 = vmul.f32 %v582_v42, %v430_v59  ;;  %v589_v53 = vmul.f32 %v581_v55, %v429_v21  ;;  %v426_v4 = vsel %vm418_vm2, 1.0, %v892_v50  ;;  %v427_v28 = vsel %vm419_vm3, 1.0, %v892_v50 }
 0x10e   : > { %v584_v40 = vsub.f32 1.0, %v576_v5  ;;  %v577_v46 = vmul.f32 %v865_v39, %v537_v6  ;;  %v591_v48 = vmul.f32 %v583_v60, %v431_v47  ;;  %v588_v7 = vmul.f32 %v580_v56, %v428_v52 }
 0x10f   : > { %v409_v8 = vmul.f32 0.5, %v1023_v54  ;;  %v587_v34 = vmul.f32 %v579_v45, %v427_v28  ;;  %v408_v10 = vmul.f32 0.5, %v1017_v49  ;;  %v598_v11 = vadd.f32 1.0, %v590_v58 }
 0x110   : > { %v592_v17 = vmul.f32 %v584_v40, %v432_v51  ;;  %v585_v0 = vsub.f32 1.0, %v577_v46  ;;  %v599_v27 = vadd.f32 1.0, %v591_v48  ;;  %v586_v13 = vmul.f32 %v578_v2, %v426_v4 }
 0x111   : > { %v407_v14 = vmul.f32 0.5, %v1008_v44  ;;  %v597_v20 = vadd.f32 1.0, %v589_v53  ;;  %v596_v22 = vadd.f32 1.0, %v588_v7  ;;  %v405_v23 = vmul.f32 0.5, %v998_v29 }
 0x112   : > { %v593_v3 = vmul.f32 %v585_v0, %v433_v1  ;;  %v600_v57 = vadd.f32 1.0, %v592_v17  ;;  %v595_v54 = vadd.f32 1.0, %v587_v34  ;;  %v404_v26 = vmul.f32 0.5, %v989_v24  ;;  %v610_v24 = vld [vmem:[%s1134_s3] sm:$0xf] }
 0x113   : > { %v607_v25 = vmul.f32 %v599_v27, %v407_v14  ;;  %v606_v30 = vmul.f32 %v598_v11, %v406_v18  ;;  %v594_v49 = vadd.f32 1.0, %v586_v13  ;;  %v403_v31 = vmul.f32 0.5, %v981_v19 }
 0x114   : > { %v601_v9 = vadd.f32 1.0, %v593_v3  ;;  %v608_v62 = vmul.f32 %v600_v57, %v408_v10  ;;  %v605_v44 = vmul.f32 %v597_v20, %v405_v23  ;;  %v402_v32 = vmul.f32 0.5, %v976_v16 }
 0x115   : > { %v604_v41 = vmul.f32 %v596_v22, %v404_v26  ;;  %v603_v38 = vmul.f32 %v595_v54, %v403_v31 }
 0x116   : > { %v609_v15 = vmul.f32 %v601_v9, %v409_v8  ;;  %v602_v29 = vmul.f32 %v594_v49, %v402_v32 }
 0x118   : > { %645 = vmatprep.subr.mxu1 %v609_v15 }
 0x119   : > { %646 = vmatpush1.msra.mxu1 %v608_v62 }
 0x11a   : > { %647 = vmatprep.subr.mxu1 %v607_v25 }
 0x11b   : > { %648 = vmatpush1.msra.mxu1 %v606_v30 }
 0x11c   : > { %649 = vmatprep.subr.mxu1 %v605_v44 }
 0x11d   : > { %650 = vmatpush1.msra.mxu1 %v604_v41 }
 0x11e   : > { %651 = vmatprep.subr.mxu1 %v603_v38 }
 0x11f   : > { %652 = vmatpush1.msra.mxu1 %v602_v29 }
 0x120   : > { %799 = vmatmul.mubr.msk.f32.vlgmr.msra.gmra.mxu1 %vm617_vm10, %v610_v24 }
 0x1e0   : > { %v687_v19 = vpop.f32.mrf.mxu1 }
 0x1e1   : > { %v688_v61 = vadd.f32 %v687_v19, %v615_v35 }
 0x1e2   : > { %v689_v12 = vpop.f32.mrf.mxu1 }
 0x1e3   : > { %v690_v16 = vadd.f32 %v689_v12, %v615_v35 }
 0x1e5   : > { %v694_v36 = vcombine.low %v688_v61, %v690_v16 }
 0x1e7   : > { %696 = vst [vmem:[%s262_s28] sm:$0xff] %v694_v36 }
 0x1e8 PF: > { %s15_s20 = sadd.s32 1, %s888_s20   ;;  %s1137_s18 = smov %s884_s19 }
 0x1e9   : > { %p12_p5 = scmp.ge.s32.totalorder %s15_s20, 4   ;;  %s1138_s19 = smov %s1140_s21 }
 0x1eb   :  { %14 = sbr.rel (!%p12_p5) target bundleno = 2 (0x2), region = 70 }

// kernel: _mlp2d_forward_impl.1
= control target key start
LH: loop header
LB: loop body
LE: loop exit
PB: predicated region body
PF: predicated region fallthrough
CT: control target
= control target key end

     0   :  { %s923_s18 = smov 0   ;;  %s925_s19 = smov 0   ;;  %s1131_s0 = inlined_call_operand.vmem [shape: f32[2,4,256], index: 0, kind: input, shape index: {}]   ;;  %s1132_s1 = inlined_call_operand.vmem [shape: f32[32,4], index: 1, kind: input, shape index: {}]   ;;  %s1133_s2 = inlined_call_operand.vmem [shape: f32[32,1], index: 2, kind: input, shape index: {}]   ;;  %s1134_s3 = inlined_call_operand.vmem [shape: f32[4,32], index: 3, kind: input, shape index: {}]   ;;  %s1135_s4 = inlined_call_operand.vmem [shape: f32[4,1], index: 4, kind: input, shape index: {}]   ;;  %s1136_s5 = inlined_call_operand.vmem [shape: f32[2,4,256], index: 5, kind: output, shape index: {}]  }
   0x1   :  { %s927_s20 = smov 0  }
   0x2 LB: > { %s27_s21 = sadd.s32 1, %s884_s19  ;;  %p788_p0 = scmp.ge.s32.totalorder %s888_s20, 1  ;;  %s888_s20 = sphi %s927_s20, %s15_s20   ;;  %s884_s19 = sphi %s925_s19, %s1138_s19   ;;  %s880_s18 = sphi %s923_s18, %s1137_s18  }
   0x3   : > { %p29_p1 = scmp.ge.s32.totalorder %s27_s21, 2  ;;  %p208_p2 = scmp.lt.s32.totalorder %s888_s20, 3 }
   0x5   : > { %s1140_s21 = smov (%p29_p1, %s27_s21), 0  ;;  %p209_p3 = pnand %p788_p0, %p208_p2 }
   0x6   : > { %p245_p4 = scmp.lt.s32.totalorder (!%p209_p3), %s880_s18, 1 }
   0x7   : > { %212 = sbr.rel (%p209_p3) target bundleno = 488 (0x1e8), region = 40 }
   0xc   : > { %v890_v0 = vmov 0.0   ;;  %v270_v1 = vld [vmem:[%s1133_s2 + $0x8] sm:$0xff]  ;;  %s1142_s18 = smov (!%p245_p4, %s880_s18), 1  ;;  %v891_v2 = vmov 0   ;;  %v272_v3 = vld [vmem:[%s1133_s2 + $0x18] sm:$0xff]  ;;  %v269_v4 = vld [vmem:[%s1133_s2] sm:$0xff] }
   0xd   : > { %377 = vmatprep.mubr.f32.mxu0 %v890_v0  ;;  %685 = vmatprep.mubr.f32.mxu1 %v890_v0  ;;  %s802_s26 = sshll.u32 %s1142_s18, 3  ;;  %v271_v5 = vld [vmem:[%s1133_s2 + $0x10] sm:$0xff]  ;;  %vm308_vm0 = vcmask 1043456   ;;  %v265_v8 = vld [vmem:[%s1132_s1] sm:$0xff]  ;;  %vm295_vm1 = vcmask 31744   ;;  %v266_v10 = vld [vmem:[%s1132_s1 + $0x8] sm:$0xff] }
   0xe   : > { %832 = vset.pattern.permute.xlu1 %v891_v2  ;;  %831 = vset.pattern.permute.xlu0 %v891_v2  ;;  %s252_s8 = scalar_lea.vmem %s1131_s0, %s802_s26  ;;  %v611_v9 = vld [vmem:[%s1135_s4] sm:$0xf]  ;;  %v267_v11 = vld [vmem:[%s1132_s1 + $0x10] sm:$0xff]  ;;  %v268_v12 = vld [vmem:[%s1132_s1 + $0x18] sm:$0xff]  ;;  %vm617_vm10 = vcmask 261120   ;;  %s262_s28 = scalar_lea.vmem %s1136_s5, %s802_s26 }
   0xf   : > { %280 = vperm.xlu1 %832, %v270_v1   ;;  %290 = vperm.xlu0 %831, %v272_v3   ;;  %v264_v6 = vld [vmem:[%s252_s8] sm:$0xff] }
  0x10   : > { %v294_v7 = vcombine.high %v264_v6, %v264_v6 }
  0x12   : > { %793 = vmatprep.subr.msk.mxu0 %vm308_vm0, %v294_v7 }
  0x13   : > { %275 = vperm.xlu1 %832, %v269_v4   ;;  %285 = vperm.xlu0 %831, %v271_v5  }
  0x14   : > { %794 = vmatpush1.msk.msra.mxu0 %vm308_vm0, %v264_v6 }
  0x15   : > { %795 = vmatmul.mubr.msk.f32.vlgmr.msra.gmra.mxu0 %vm295_vm1, %v265_v8 }
  0x16   : > { %383 = vmatprep.mubr.f32.mxu0 %v890_v0 }
  0x17   : > { %614 = vperm.xlu0 %831, %v611_v9  }
  0x19   : > { %796 = vmatmul.mubr.msk.f32.gmra.mxu0 %vm295_vm1, %v266_v10 }
  0x1a   : > { %389 = vmatprep.mubr.f32.mxu0 %v890_v0 }
  0x1d   : > { %797 = vmatmul.mubr.msk.f32.gmra.mxu0 %vm295_vm1, %v267_v11 }
  0x1e   : > { %395 = vmatprep.mubr.f32.mxu0 %v890_v0 }
  0x21   : > { %798 = vmatmul.mubr.msk.f32.gmra.mxu0 %vm295_vm1, %v268_v12 }
  0x8a   : > { %v281_v13 = vpop.permute.xlu1 %280  ;;  %v291_v23 = vpop.permute.xlu0 %290 }
  0x8e   : > { %v276_v14 = vpop.permute.xlu1 %275  ;;  %v286_v37 = vpop.permute.xlu0 %285 }
  0xd5   : > { %v379_v15 = vpop.f32.mrf.mxu0 }
  0xd6   : > { %v976_v16 = vadd.f32 %v379_v15, %v276_v14 }
  0xd7   : > { %v381_v17 = vpop.f32.mrf.mxu0 }
  0xd8   : > { %v979_v18 = vmul.f32 0.70710677, %v976_v16  ;;  %v981_v19 = vadd.f32 %v381_v17, %v276_v14 }
  0xd9   : > { %v385_v20 = vpop.f32.mrf.mxu0 }
  0xda   : > { %v984_v21 = vand.u32 2147483647, %v979_v18  ;;  %v987_v22 = vmul.f32 0.70710677, %v981_v19  ;;  %v989_v24 = vadd.f32 %v385_v20, %v281_v13  ;;  %vm418_vm2 = vcmp.ge.f32.partialorder %v979_v18, 0.0 }
  0xdb   : > { %v387_v25 = vpop.f32.mrf.mxu0 }
  0xdc   : > { %v442_v26 = vmul.f32 0.3275911, %v984_v21  ;;  %v993_v27 = vand.u32 2147483647, %v987_v22  ;;  %v996_v28 = vmul.f32 0.70710677, %v989_v24  ;;  %v998_v29 = vadd.f32 %v387_v25, %v281_v13 }
  0xdd   : > { %v391_v30 = vpop.f32.mrf.mxu0  ;;  %v538_v10 = vsub.f32 0.0, %v984_v21  ;;  %vm419_vm3 = vcmp.ge.f32.partialorder %v987_v22, 0.0 }
  0xde   : > { %v450_v31 = vadd.f32 1.0, %v442_v26  ;;  %v443_v32 = vmul.f32 0.3275911, %v993_v27  ;;  %v436_v33 = vand.u32 2147483647, %v996_v28  ;;  %v1006_v41 = vadd.f32 %v391_v30, %v286_v37 }
  0xdf   : > { %v1003_v34 = vmul.f32 0.70710677, %v998_v29  ;;  %v393_v35 = vpop.f32.mrf.mxu0  ;;  %v546_v30 = vmul.f32 %v538_v10, %v984_v21  ;;  %vm420_vm9 = vcmp.ge.f32.partialorder %v996_v28, 0.0 }
  0xe0   : > { %v451_v36 = vadd.f32 1.0, %v443_v32  ;;  %834 = vrcp.f32 %v450_v31  ;;  %v444_v38 = vmul.f32 0.3275911, %v436_v33  ;;  %v1008_v44 = vadd.f32 %v393_v35, %v286_v37 }
  0xe1   : > { %v437_v39 = vand.u32 2147483647, %v1003_v34  ;;  %v397_v42 = vpop.f32.mrf.mxu0  ;;  %v1011_v45 = vmul.f32 0.70710677, %v1006_v41  ;;  %v540_v2 = vsub.f32 0.0, %v436_v33  ;;  %vm421_vm4 = vcmp.ge.f32.partialorder %v1003_v34, 0.0 }
  0xe2   : > { %836 = vrcp.f32 %v451_v36  ;;  %v452_v40 = vadd.f32 1.0, %v444_v38  ;;  %v1014_v47 = vmul.f32 0.70710677, %v1008_v44  ;;  %v1017_v49 = vadd.f32 %v397_v42, %v291_v23 }
  0xe3   : > { %v445_v43 = vmul.f32 0.3275911, %v437_v39  ;;  %v438_v48 = vand.u32 2147483647, %v1011_v45  ;;  %v399_v50 = vpop.f32.mrf.mxu0  ;;  %v541_v6 = vsub.f32 0.0, %v437_v39  ;;  %v548_v13 = vmul.f32 %v540_v2, %v436_v33 }
  0xe4   : > { %838 = vrcp.f32 %v452_v40  ;;  %v439_v52 = vand.u32 2147483647, %v1014_v47  ;;  %v1021_v53 = vmul.f32 0.70710677, %v1017_v49  ;;  %v1023_v54 = vadd.f32 %v399_v50, %v291_v23 }
  0xe5   : > { %v453_v46 = vadd.f32 1.0, %v445_v43  ;;  %v446_v51 = vmul.f32 0.3275911, %v438_v48  ;;  %v542_v14 = vsub.f32 0.0, %v438_v48  ;;  %v549_v17 = vmul.f32 %v541_v6, %v437_v39 }
  0xe6   : > { %v447_v56 = vmul.f32 0.3275911, %v439_v52  ;;  %v440_v57 = vand.u32 2147483647, %v1021_v53  ;;  %v1027_v58 = vmul.f32 0.70710677, %v1023_v54 }
  0xe7   : > { %840 = vrcp.f32 %v453_v46  ;;  %v454_v55 = vadd.f32 1.0, %v446_v51  ;;  %v543_v20 = vsub.f32 0.0, %v439_v52  ;;  %v539_v36 = vsub.f32 0.0, %v993_v27 }
  0xe8   : > { %v455_v59 = vadd.f32 1.0, %v447_v56  ;;  %v448_v61 = vmul.f32 0.3275911, %v440_v57  ;;  %v441_v62 = vand.u32 2147483647, %v1027_v58  ;;  %v544_v31 = vsub.f32 0.0, %v440_v57 }
  0xe9   : > { %842 = vrcp.f32 %v454_v55  ;;  %v558_v33 = vmul.f32 1.442695, %v548_v13  ;;  %v550_v37 = vmul.f32 %v542_v14, %v438_v48  ;;  %v560_v39 = vmul.f32 1.442695, %v549_v17 }
  0xea   : > { %844 = vrcp.f32 %v455_v59  ;;  %v456_v0 = vadd.f32 1.0, %v448_v61  ;;  %v449_v1 = vmul.f32 0.3275911, %v441_v62  ;;  %v551_v40 = vmul.f32 %v543_v20, %v439_v52 }
  0xeb   : > { %v545_v46 = vsub.f32 0.0, %v441_v62  ;;  %v554_v21 = vmul.f32 1.442695, %v546_v30  ;;  %v552_v55 = vmul.f32 %v544_v31, %v440_v57  ;;  %v562_v48 = vmul.f32 1.442695, %v550_v37 }
  0xec   : > { %846 = vrcp.f32 %v456_v0  ;;  %v457_v7 = vadd.f32 1.0, %v449_v1  ;;  %v547_v0 = vmul.f32 %v539_v36, %v993_v27  ;;  %v564_v2 = vmul.f32 1.442695, %v551_v40 }
  0xed   : > { %v1029_v60 = vpop.eup %834  ;;  %v553_v57 = vmul.f32 %v545_v46, %v441_v62  ;;  %vm424_vm5 = vcmp.ge.f32.partialorder %v1021_v53, 0.0  ;;  %vm423_vm6 = vcmp.ge.f32.partialorder %v1014_v47, 0.0  ;;  %vm422_vm7 = vcmp.ge.f32.partialorder %v1011_v45, 0.0 }
  0xee   : > { %v466_v4 = vmul.f32 1.0614054, %v1029_v60  ;;  %848 = vrcp.f32 %v457_v7  ;;  %v556_v13 = vmul.f32 1.442695, %v547_v0  ;;  %vm425_vm8 = vcmp.ge.f32.partialorder %v1027_v58, 0.0 }
  0xef   : > { %v1032_v63 = vpop.eup %836  ;;  %850 = vpow2.f32 %v558_v33  ;;  %v406_v18 = vmul.f32 0.5, %v1006_v41 }
  0xf0   : > { %v467_v3 = vmul.f32 1.0614054, %v1032_v63  ;;  %v474_v11 = vadd.f32 -1.4531521, %v466_v4  ;;  %852 = vpow2.f32 %v560_v39 }
  0xf1   : > { %v1036_v5 = vpop.eup %838  ;;  %854 = vpow2.f32 %v562_v48 }
  0xf2   : > { %v468_v8 = vmul.f32 1.0614054, %v1036_v5  ;;  %v475_v9 = vadd.f32 -1.4531521, %v467_v3  ;;  %v482_v35 = vmul.f32 %v1029_v60, %v474_v11  ;;  %856 = vpow2.f32 %v564_v2 }
  0xf4   : > { %v1040_v12 = vpop.eup %840  ;;  %v476_v15 = vadd.f32 -1.4531521, %v468_v8  ;;  %v483_v26 = vmul.f32 %v1032_v63, %v475_v9  ;;  %v490_v59 = vadd.f32 1.4214138, %v482_v35  ;;  %v566_v9 = vmul.f32 1.442695, %v552_v55 }
  0xf5   : > { %v469_v23 = vmul.f32 1.0614054, %v1040_v12 }
  0xf6   : > { %v484_v25 = vmul.f32 %v1036_v5, %v476_v15  ;;  %v1048_v38 = vpop.eup %842  ;;  %v491_v51 = vadd.f32 1.4214138, %v483_v26  ;;  %v498_v11 = vmul.f32 %v1029_v60, %v490_v59  ;;  %858 = vpow2.f32 %v566_v9 }
  0xf7   : > { %v477_v32 = vadd.f32 -1.4531521, %v469_v23  ;;  %v470_v50 = vmul.f32 1.0614054, %v1048_v38  ;;  %v1052_v61 = vpop.eup %844  ;;  %860 = vpow2.f32 %v556_v13 }
  0xf8   : > { %v492_v43 = vadd.f32 1.4214138, %v484_v25  ;;  %v471_v52 = vmul.f32 1.0614054, %v1052_v61  ;;  %v499_v8 = vmul.f32 %v1032_v63, %v491_v51  ;;  %v568_v25 = vmul.f32 1.442695, %v553_v57 }
  0xf9   : > { %v485_v42 = vmul.f32 %v1040_v12, %v477_v32  ;;  %v478_v1 = vadd.f32 -1.4531521, %v470_v50  ;;  %v1058_v6 = vpop.eup %846  ;;  %v506_v36 = vadd.f32 -0.28449672, %v498_v11  ;;  %862 = vpow2.f32 %v554_v21 }
  0xfa   : > { %v500_v4 = vmul.f32 %v1036_v5, %v492_v43  ;;  %v472_v27 = vmul.f32 1.0614054, %v1058_v6  ;;  %v479_v10 = vadd.f32 -1.4531521, %v471_v52  ;;  %v507_v31 = vadd.f32 -0.28449672, %v499_v8 }
  0xfb   : > { %v493_v56 = vadd.f32 1.4214138, %v485_v42  ;;  %v486_v7 = vmul.f32 %v1048_v38, %v478_v1  ;;  %v1064_v17 = vpop.eup %848  ;;  %864 = vpow2.f32 %v568_v25  ;;  %v514_v59 = vmul.f32 %v1029_v60, %v506_v36 }
  0xfc   : > { %v480_v20 = vadd.f32 -1.4531521, %v472_v27  ;;  %v487_v62 = vmul.f32 %v1052_v61, %v479_v10  ;;  %v508_v23 = vadd.f32 -0.28449672, %v500_v4  ;;  %v473_v26 = vmul.f32 1.0614054, %v1064_v17  ;;  %v851_v1 = vpop.eup %850 }
  0xfd   : > { %v501_v3 = vmul.f32 %v1040_v12, %v493_v56  ;;  %v494_v14 = vadd.f32 1.4214138, %v486_v7  ;;  %v515_v51 = vmul.f32 %v1032_v63, %v507_v31  ;;  %v853_v7 = vpop.eup %852  ;;  %v522_v10 = vadd.f32 0.2548296, %v514_v59 }
  0xfe   : > { %v488_v32 = vmul.f32 %v1058_v6, %v480_v20  ;;  %v495_v35 = vadd.f32 1.4214138, %v487_v62  ;;  %v481_v33 = vadd.f32 -1.4531521, %v473_v26  ;;  %v516_v43 = vmul.f32 %v1036_v5, %v508_v23 }
  0xff   : > { %v509_v15 = vadd.f32 -0.28449672, %v501_v3  ;;  %v502_v30 = vmul.f32 %v1048_v38, %v494_v14  ;;  %v523_v57 = vadd.f32 0.2548296, %v515_v51  ;;  %v855_v14 = vpop.eup %854 }
 0x100   : > { %v496_v40 = vadd.f32 1.4214138, %v488_v32  ;;  %v503_v42 = vmul.f32 %v1052_v61, %v495_v35  ;;  %v489_v46 = vmul.f32 %v1064_v17, %v481_v33  ;;  %v524_v3 = vadd.f32 0.2548296, %v516_v43  ;;  %v857_v23 = vpop.eup %856 }
 0x101   : > { %v510_v37 = vadd.f32 -0.28449672, %v502_v30  ;;  %v517_v39 = vmul.f32 %v1040_v12, %v509_v15  ;;  %v531_v26 = vmul.f32 %v1032_v63, %v523_v57 }
 0x102   : > { %v504_v55 = vmul.f32 %v1058_v6, %v496_v40  ;;  %v511_v56 = vadd.f32 -0.28449672, %v503_v42  ;;  %v497_v0 = vadd.f32 1.4214138, %v489_v46  ;;  %v532_v62 = vmul.f32 %v1036_v5, %v524_v3 }
 0x103   : > { %v518_v50 = vmul.f32 %v1048_v38, %v510_v37  ;;  %v525_v21 = vadd.f32 0.2548296, %v517_v39  ;;  %v859_v35 = vpop.eup %858 }
 0x104   : > { %v512_v2 = vadd.f32 -0.28449672, %v504_v55  ;;  %v519_v52 = vmul.f32 %v1052_v61, %v511_v56  ;;  %v505_v4 = vmul.f32 %v1064_v17, %v497_v0  ;;  %v861_v36 = vpop.eup %860  ;;  %v572_v63 = vmul.f32 %v851_v1, %v532_v62 }
 0x105   : > { %v526_v48 = vadd.f32 0.2548296, %v518_v50  ;;  %v533_v13 = vmul.f32 %v1040_v12, %v525_v21  ;;  %v571_v37 = vmul.f32 %v861_v36, %v531_v26  ;;  %v892_v50 = vmov -1.0  }
 0x106   : > { %v520_v8 = vmul.f32 %v1058_v6, %v512_v2  ;;  %v527_v9 = vadd.f32 0.2548296, %v519_v52  ;;  %v513_v11 = vadd.f32 -0.28449672, %v505_v4  ;;  %v863_v33 = vpop.eup %862  ;;  %v432_v51 = vsel %vm424_vm5, 1.0, %v892_v50 }
 0x107   : > { %v534_v27 = vmul.f32 %v1048_v38, %v526_v48  ;;  %v530_v38 = vmul.f32 %v1029_v60, %v522_v10  ;;  %v431_v47 = vsel %vm423_vm6, 1.0, %v892_v50  ;;  %v580_v56 = vsub.f32 1.0, %v572_v63 }
 0x108   : > { %v528_v15 = vadd.f32 0.2548296, %v520_v8  ;;  %v535_v20 = vmul.f32 %v1052_v61, %v527_v9  ;;  %v521_v25 = vmul.f32 %v1064_v17, %v513_v11  ;;  %v573_v61 = vmul.f32 %v853_v7, %v533_v13  ;;  %v865_v39 = vpop.eup %864 }
 0x109   : > { %v574_v32 = vmul.f32 %v855_v14, %v534_v27  ;;  %v570_v43 = vmul.f32 %v863_v33, %v530_v38  ;;  %v430_v59 = vsel %vm422_vm7, 1.0, %v892_v50  ;;  %v579_v45 = vsub.f32 1.0, %v571_v37 }
 0x10a   : > { %v536_v30 = vmul.f32 %v1058_v6, %v528_v15  ;;  %v575_v31 = vmul.f32 %v857_v23, %v535_v20  ;;  %v529_v12 = vadd.f32 0.2548296, %v521_v25  ;;  %v581_v55 = vsub.f32 1.0, %v573_v61 }
 0x10b   : > { %v582_v42 = vsub.f32 1.0, %v574_v32  ;;  %v429_v21 = vsel %vm421_vm4, 1.0, %v892_v50  ;;  %v433_v1 = vsel %vm425_vm8, 1.0, %v892_v50  ;;  %v578_v2 = vsub.f32 1.0, %v570_v43 }
 0x10c   : > { %v576_v5 = vmul.f32 %v859_v35, %v536_v30  ;;  %v537_v6 = vmul.f32 %v1064_v17, %v529_v12  ;;  %v583_v60 = vsub.f32 1.0, %v575_v31  ;;  %v428_v52 = vsel %vm420_vm9, 1.0, %v892_v50  ;;  %v615_v35 = vpop.permute.xlu0 %614 }
 0x10d   : > { %v590_v58 = vmul.f32 %v582_v42, %v430_v59  ;;  %v589_v53 = vmul.f32 %v581_v55, %v429_v21  ;;  %v426_v4 = vsel %vm418_vm2, 1.0, %v892_v50  ;;  %v427_v28 = vsel %vm419_vm3, 1.0, %v892_v50 }
 0x10e   : > { %v584_v40 = vsub.f32 1.0, %v576_v5  ;;  %v577_v46 = vmul.f32 %v865_v39, %v537_v6  ;;  %v591_v48 = vmul.f32 %v583_v60, %v431_v47  ;;  %v588_v7 = vmul.f32 %v580_v56, %v428_v52 }
 0x10f   : > { %v409_v8 = vmul.f32 0.5, %v1023_v54  ;;  %v587_v34 = vmul.f32 %v579_v45, %v427_v28  ;;  %v408_v10 = vmul.f32 0.5, %v1017_v49  ;;  %v598_v11 = vadd.f32 1.0, %v590_v58 }
 0x110   : > { %v592_v17 = vmul.f32 %v584_v40, %v432_v51  ;;  %v585_v0 = vsub.f32 1.0, %v577_v46  ;;  %v599_v27 = vadd.f32 1.0, %v591_v48  ;;  %v586_v13 = vmul.f32 %v578_v2, %v426_v4 }
 0x111   : > { %v407_v14 = vmul.f32 0.5, %v1008_v44  ;;  %v597_v20 = vadd.f32 1.0, %v589_v53  ;;  %v596_v22 = vadd.f32 1.0, %v588_v7  ;;  %v405_v23 = vmul.f32 0.5, %v998_v29 }
 0x112   : > { %v593_v3 = vmul.f32 %v585_v0, %v433_v1  ;;  %v600_v57 = vadd.f32 1.0, %v592_v17  ;;  %v595_v54 = vadd.f32 1.0, %v587_v34  ;;  %v404_v26 = vmul.f32 0.5, %v989_v24  ;;  %v610_v24 = vld [vmem:[%s1134_s3] sm:$0xf] }
 0x113   : > { %v607_v25 = vmul.f32 %v599_v27, %v407_v14  ;;  %v606_v30 = vmul.f32 %v598_v11, %v406_v18  ;;  %v594_v49 = vadd.f32 1.0, %v586_v13  ;;  %v403_v31 = vmul.f32 0.5, %v981_v19 }
 0x114   : > { %v601_v9 = vadd.f32 1.0, %v593_v3  ;;  %v608_v62 = vmul.f32 %v600_v57, %v408_v10  ;;  %v605_v44 = vmul.f32 %v597_v20, %v405_v23  ;;  %v402_v32 = vmul.f32 0.5, %v976_v16 }
 0x115   : > { %v604_v41 = vmul.f32 %v596_v22, %v404_v26  ;;  %v603_v38 = vmul.f32 %v595_v54, %v403_v31 }
 0x116   : > { %v609_v15 = vmul.f32 %v601_v9, %v409_v8  ;;  %v602_v29 = vmul.f32 %v594_v49, %v402_v32 }
 0x118   : > { %645 = vmatprep.subr.mxu1 %v609_v15 }
 0x119   : > { %646 = vmatpush1.msra.mxu1 %v608_v62 }
 0x11a   : > { %647 = vmatprep.subr.mxu1 %v607_v25 }
 0x11b   : > { %648 = vmatpush1.msra.mxu1 %v606_v30 }
 0x11c   : > { %649 = vmatprep.subr.mxu1 %v605_v44 }
 0x11d   : > { %650 = vmatpush1.msra.mxu1 %v604_v41 }
 0x11e   : > { %651 = vmatprep.subr.mxu1 %v603_v38 }
 0x11f   : > { %652 = vmatpush1.msra.mxu1 %v602_v29 }
 0x120   : > { %799 = vmatmul.mubr.msk.f32.vlgmr.msra.gmra.mxu1 %vm617_vm10, %v610_v24 }
 0x1e0   : > { %v687_v19 = vpop.f32.mrf.mxu1 }
 0x1e1   : > { %v688_v61 = vadd.f32 %v687_v19, %v615_v35 }
 0x1e2   : > { %v689_v12 = vpop.f32.mrf.mxu1 }
 0x1e3   : > { %v690_v16 = vadd.f32 %v689_v12, %v615_v35 }
 0x1e5   : > { %v694_v36 = vcombine.low %v688_v61, %v690_v16 }
 0x1e7   : > { %696 = vst [vmem:[%s262_s28] sm:$0xff] %v694_v36 }
 0x1e8 PF: > { %s15_s20 = sadd.s32 1, %s888_s20   ;;  %s1137_s18 = smov %s884_s19 }
 0x1e9   : > { %p12_p5 = scmp.ge.s32.totalorder %s15_s20, 4   ;;  %s1138_s19 = smov %s1140_s21 }
 0x1eb   :  { %14 = sbr.rel (!%p12_p5) target bundleno = 2 (0x2), region = 70 }

</bundles_post_ra>
